<compile_context>
chip_gen: v6e
topology: v6e:2x2x1
jax: 0.10.0
libtpu: 0.0.40
codegen_flags: <defaults>
</compile_context>

<pallas_src>
import functools

import jax
import jax.numpy as jnp
from jax.experimental import pallas as pl
from jax.experimental.pallas import tpu as pltpu

block_size = 8
n_embed = 32

_NEG = -1e30  # finite "minus infinity" for padded vocab lanes


def bigram_kernel(*refs, B, T, V, compute_loss):
    if compute_loss:
        (idx_ref, tgt_ref, tok_ref, pos_ref, w_ref, b_ref,
         logits_ref, loss_ref) = refs
    else:
        idx_ref, tok_ref, pos_ref, w_ref, b_ref, logits_ref = refs
        tgt_ref = loss_ref = None

    BT = B * T
    Vp, E = tok_ref.shape

    idx = idx_ref[...]                                         # (BT, 1) int32
    lane_v = jax.lax.broadcasted_iota(jnp.int32, (BT, Vp), 1)

    # Token-embedding gather as an exact one-hot matmul (bf16 MXU, f32 acc).
    onehot = (lane_v == idx).astype(jnp.bfloat16)              # (BT, Vp)
    tok_emb = jnp.dot(onehot, tok_ref[...],
                      preferred_element_type=jnp.float32)      # (BT, E) f32

    # Positional embedding broadcast across the batch (in embedding space).
    pos_full = jnp.broadcast_to(pos_ref[...].astype(jnp.float32)[None],
                                (B, T, E)).reshape(BT, E)
    x = tok_emb + pos_full                                     # (BT, E) f32

    # lm_head: (BT, E) x (E, Vp) + bias.  Padded vocab columns of W are zero.
    logits = jnp.dot(x.astype(jnp.bfloat16), w_ref[...],
                     preferred_element_type=jnp.float32) + b_ref[...]
    # Mask padded vocab lanes so downstream softmax / argmax ignore them.
    logits = jnp.where(lane_v >= V, _NEG, logits)
    logits_ref[...] = logits                                   # lane-dense (BT, 128)

    if compute_loss:
        # Cross entropy, mean over B*T rows (matches F.cross_entropy).
        # Padded lanes hold -1e30: they never win the max and exp(-1e30 - m)
        # underflows to 0, so the LSE equals the unpadded one.  The one-hot
        # pick gives 0 * (-1e30) == -0.0 on padded lanes, so it stays NaN-free.
        tgt = tgt_ref[...]                                     # (BT, 1) int32
        m = jnp.max(logits, axis=-1, keepdims=True)
        lse = m + jnp.log(jnp.sum(jnp.exp(logits - m), axis=-1, keepdims=True))
        tgt_onehot = (lane_v == tgt).astype(jnp.float32)
        picked = jnp.sum(tgt_onehot * logits, axis=-1, keepdims=True)
        loss_ref[...] = jnp.mean(lse - picked).reshape(1, 1)


@functools.partial(jax.jit, static_argnames=("compute_loss",))
def _forward(idx, targets, tok_table, pos_table, w_t, b, *, compute_loss):
    B, T = idx.shape
    V, E = tok_table.shape
    BT = B * T
    Vp = ((V + 127) // 128) * 128          # lane-dense padded vocab (= 128)

    # Parameter prep (fused under jit): zero-pad vocab, cast MXU operands to
    # bf16 (halves their DMA/VMEM footprint); bias stays f32 (added post-acc).
    tok_pad = jnp.pad(tok_table, ((0, Vp - V), (0, 0))).astype(jnp.bfloat16)
    w_pad = jnp.pad(w_t, ((0, 0), (0, Vp - V))).astype(jnp.bfloat16)
    b_pad = jnp.pad(b, (0, Vp - V)).reshape(1, Vp).astype(jnp.float32)
    pos_bf = pos_table[:T].astype(jnp.bfloat16)

    idx_flat = idx.reshape(BT, 1).astype(jnp.int32)

    vmem = pl.BlockSpec(memory_space=pltpu.MemorySpace.VMEM)
    kernel = functools.partial(bigram_kernel, B=B, T=T, V=V,
                               compute_loss=compute_loss)

    if compute_loss:
        tgt_flat = targets.reshape(BT, 1).astype(jnp.int32)
        logits_pad, loss = pl.pallas_call(
            kernel,
            out_shape=(jax.ShapeDtypeStruct((BT, Vp), jnp.float32),
                       jax.ShapeDtypeStruct((1, 1), jnp.float32)),
            in_specs=[vmem] * 6,
            out_specs=(vmem, vmem),
        )(idx_flat, tgt_flat, tok_pad, pos_bf, w_pad, b_pad)
        loss = loss[0, 0]
    else:
        logits_pad = pl.pallas_call(
            kernel,
            out_shape=jax.ShapeDtypeStruct((BT, Vp), jnp.float32),
            in_specs=[vmem] * 5,
            out_specs=vmem,
        )(idx_flat, tok_pad, pos_bf, w_pad, b_pad)
        loss = None

    logits = logits_pad[:, :V].reshape(B, T, V)
    return logits, loss


def bigram_forward(idx, targets, tok_table, pos_table, w_t, b):
    """idx, targets: (B, T) int32. Returns (logits (B,T,V), loss scalar or None)."""
    return _forward(idx, targets, tok_table, pos_table, w_t, b,
                    compute_loss=targets is not None)


def ref_forward(idx, targets, tok_table, pos_table, w_t, b):
    """Pure-JAX reference mirroring the PyTorch forward."""
    B, T = idx.shape
    tok_emb = tok_table[idx]                       # (B, T, E)
    pos_emb = pos_table[jnp.arange(T)]             # (T, E)
    x = tok_emb + pos_emb[None, :, :]
    logits = x @ w_t + b                           # (B, T, V)
    lf = logits.reshape(B * T, -1)
    tg = targets.reshape(-1)
    lse = jax.scipy.special.logsumexp(lf, axis=-1)
    nll = lse - lf[jnp.arange(B * T), tg]
    return logits, jnp.mean(nll)


# TODO(synk): generate()'s autoregressive torch.multinomial sampling loop is
# host-side control flow; only the forward pass is implemented as a kernel.

if __name__ == "__main__":
    vocab_size = 65
    B, T = 2, block_size

    key = jax.random.PRNGKey(0)
    k1, k2, k3, k4, k5, k6 = jax.random.split(key, 6)

    # Deterministic parameter init (shapes from the module's __init__).
    tok_table = 0.1 * jax.random.normal(k1, (vocab_size, n_embed), jnp.float32)
    pos_table = 0.1 * jax.random.normal(k2, (block_size, n_embed), jnp.float32)
    w_t = 0.1 * jax.random.normal(k3, (n_embed, vocab_size), jnp.float32)  # lm_head.weight.T
    b = 0.01 * jax.random.normal(k4, (vocab_size,), jnp.float32)           # lm_head.bias

    idx = jax.random.randint(k5, (B, T), 0, vocab_size, jnp.int32)
    targets = jax.random.randint(k6, (B, T), 0, vocab_size, jnp.int32)

    # With targets: logits + mean cross-entropy loss.
    logits, loss = bigram_forward(idx, targets, tok_table, pos_table, w_t, b)
    jax.block_until_ready((logits, loss))

    logits_ref, loss_ref = ref_forward(idx, targets, tok_table, pos_table, w_t, b)
    assert logits.shape == (B, T, vocab_size)
    assert jnp.allclose(logits, logits_ref, atol=5e-3, rtol=5e-3)
    assert jnp.allclose(loss, loss_ref, atol=5e-3, rtol=5e-3)

    # Without targets: loss branch is compiled out; logits identical.
    logits_nt, loss_nt = bigram_forward(idx, None, tok_table, pos_table, w_t, b)
    jax.block_until_ready(logits_nt)
    assert loss_nt is None
    assert jnp.allclose(logits_nt, logits, atol=0, rtol=0)

    print("KERNEL_OK")
</pallas_src>

<mosaic_0001>
module attributes {stable_mosaic.version = 11 : i64} {
  func.func @bigram_kernel(%arg0: memref<16x1xi32, #tpu.memory_space<vmem>>, %arg1: memref<16x1xi32, #tpu.memory_space<vmem>>, %arg2: memref<128x32xbf16, #tpu.memory_space<vmem>>, %arg3: memref<8x32xbf16, #tpu.memory_space<vmem>>, %arg4: memref<32x128xbf16, #tpu.memory_space<vmem>>, %arg5: memref<1x128xf32, #tpu.memory_space<vmem>>, %arg6: memref<16x128xf32, #tpu.memory_space<vmem>>, %arg7: memref<1x1xf32, #tpu.memory_space<vmem>>) attributes {dimension_semantics = [], scalar_prefetch = 0 : i64, scratch_operands = 0 : i64, tpu.core_type = #tpu.core_type<tc>} {
    %c0 = arith.constant 0 : index
    %c0_0 = arith.constant 0 : index
    %0 = vector.load %arg0[%c0, %c0_0] : memref<16x1xi32, #tpu.memory_space<vmem>>, vector<16x1xi32>
    %1 = tpu.iota {dimensions = array<i32: 1>} : vector<16x128xi32>
    %2 = vector.broadcast %0 : vector<16x1xi32> to vector<16x128xi32>
    %3 = arith.cmpi eq, %1, %2 : vector<16x128xi32>
    %4 = arith.extui %3 : vector<16x128xi1> to vector<16x128xi32>
    %5 = arith.sitofp %4 : vector<16x128xi32> to vector<16x128xf32>
    %6 = arith.truncf %5 : vector<16x128xf32> to vector<16x128xbf16>
    %c0_1 = arith.constant 0 : index
    %c0_2 = arith.constant 0 : index
    %7 = vector.load %arg2[%c0_1, %c0_2] : memref<128x32xbf16, #tpu.memory_space<vmem>>, vector<128x32xbf16>
    %cst = arith.constant dense<0.000000e+00> : vector<16x32xf32>
    %8 = tpu.matmul %6, %7, %cst {dimension_numbers = #tpu.dot_dimension_numbers<[1], [0], [0], [1], [0, 0, 1, 1], [], []>} : vector<16x128xbf16>, vector<128x32xbf16>, vector<16x32xf32> -> vector<16x32xf32>
    %c0_3 = arith.constant 0 : index
    %c0_4 = arith.constant 0 : index
    %9 = vector.load %arg3[%c0_3, %c0_4] : memref<8x32xbf16, #tpu.memory_space<vmem>>, vector<8x32xbf16>
    %10 = arith.extf %9 : vector<8x32xbf16> to vector<8x32xf32>
    %11 = vector.shape_cast %10 : vector<8x32xf32> to vector<1x8x32xf32>
    %12 = vector.shape_cast %11 : vector<1x8x32xf32> to vector<1x8x32xf32>
    %13 = vector.broadcast %12 : vector<1x8x32xf32> to vector<2x8x32xf32>
    %14 = vector.shape_cast %13 : vector<2x8x32xf32> to vector<16x32xf32>
    %15 = arith.addf %8, %14 : vector<16x32xf32>
    %16 = arith.truncf %15 : vector<16x32xf32> to vector<16x32xbf16>
    %c0_5 = arith.constant 0 : index
    %c0_6 = arith.constant 0 : index
    %17 = vector.load %arg4[%c0_5, %c0_6] : memref<32x128xbf16, #tpu.memory_space<vmem>>, vector<32x128xbf16>
    %cst_7 = arith.constant dense<0.000000e+00> : vector<16x128xf32>
    %18 = tpu.matmul %16, %17, %cst_7 {dimension_numbers = #tpu.dot_dimension_numbers<[1], [0], [0], [1], [0, 0, 1, 1], [], []>} : vector<16x32xbf16>, vector<32x128xbf16>, vector<16x128xf32> -> vector<16x128xf32>
    %c0_8 = arith.constant 0 : index
    %c0_9 = arith.constant 0 : index
    %19 = vector.load %arg5[%c0_8, %c0_9] : memref<1x128xf32, #tpu.memory_space<vmem>>, vector<1x128xf32>
    %20 = vector.broadcast %19 : vector<1x128xf32> to vector<16x128xf32>
    %21 = arith.addf %18, %20 : vector<16x128xf32>
    %c65_i32 = arith.constant 65 : i32
    %22 = vector.broadcast %c65_i32 : i32 to vector<16x128xi32>
    %23 = arith.cmpi sge, %1, %22 : vector<16x128xi32>
    %cst_10 = arith.constant -1.000000e+30 : f32
    %24 = vector.broadcast %cst_10 : f32 to vector<16x128xf32>
    %25 = arith.select %23, %24, %21 : vector<16x128xi1>, vector<16x128xf32>
    %c0_11 = arith.constant 0 : index
    %c0_12 = arith.constant 0 : index
    %26 = vector.load %arg6[%c0_11, %c0_12] : memref<16x128xf32, #tpu.memory_space<vmem>>, vector<16x128xf32>
    tpu.vector_store %arg6[%c0_11, %c0_12], %25 {strides = array<i32>} : memref<16x128xf32, #tpu.memory_space<vmem>>, vector<16x128xf32>,
    %c0_13 = arith.constant 0 : index
    %c0_14 = arith.constant 0 : index
    %27 = vector.load %arg1[%c0_13, %c0_14] : memref<16x1xi32, #tpu.memory_space<vmem>>, vector<16x1xi32>
    %cst_15 = arith.constant dense<0xFF800000> : vector<16xf32>
    %28 = vector.multi_reduction <maximumf>, %25, %cst_15 [1] : vector<16x128xf32> to vector<16xf32>
    %29 = vector.shape_cast %28 : vector<16xf32> to vector<16x1xf32>
    %30 = vector.broadcast %29 : vector<16x1xf32> to vector<16x128xf32>
    %31 = arith.subf %25, %30 : vector<16x128xf32>
    %32 = math.exp %31 : vector<16x128xf32>
    %cst_16 = arith.constant dense<0.000000e+00> : vector<16xf32>
    %33 = vector.multi_reduction <add>, %32, %cst_16 [1] : vector<16x128xf32> to vector<16xf32>
    %34 = vector.shape_cast %33 : vector<16xf32> to vector<16x1xf32>
    %35 = math.log %34 : vector<16x1xf32>
    %36 = arith.addf %29, %35 : vector<16x1xf32>
    %37 = vector.broadcast %27 : vector<16x1xi32> to vector<16x128xi32>
    %38 = arith.cmpi eq, %1, %37 : vector<16x128xi32>
    %39 = arith.extui %38 : vector<16x128xi1> to vector<16x128xi32>
    %40 = arith.sitofp %39 : vector<16x128xi32> to vector<16x128xf32>
    %41 = arith.mulf %40, %25 : vector<16x128xf32>
    %cst_17 = arith.constant dense<0.000000e+00> : vector<16xf32>
    %42 = vector.multi_reduction <add>, %41, %cst_17 [1] : vector<16x128xf32> to vector<16xf32>
    %43 = vector.shape_cast %42 : vector<16xf32> to vector<16x1xf32>
    %44 = arith.subf %36, %43 : vector<16x1xf32>
    %45 = vector.shape_cast %44 : vector<16x1xf32> to vector<1x16x1xf32>
    %cst_18 = arith.constant dense<0.000000e+00> : vector<1xf32>
    %46 = vector.multi_reduction <add>, %45, %cst_18 [1, 2] : vector<1x16x1xf32> to vector<1xf32>
    %47 = vector.shape_cast %46 : vector<1xf32> to vector<1x1x1xf32>
    %48 = vector.extract %47[0, 0, 0] : f32 from vector<1x1x1xf32>
    %cst_19 = arith.constant 1.600000e+01 : f32
    %49 = arith.divf %48, %cst_19 : f32
    %50 = vector.broadcast %49 : f32 to vector<1x1xf32>
    %c0_20 = arith.constant 0 : index
    %c0_21 = arith.constant 0 : index
    %51 = vector.load %arg7[%c0_20, %c0_21] : memref<1x1xf32, #tpu.memory_space<vmem>>, vector<1x1xf32>
    tpu.vector_store %arg7[%c0_20, %c0_21], %50 {strides = array<i32>} : memref<1x1xf32, #tpu.memory_space<vmem>>, vector<1x1xf32>,
    return
  }
}

</mosaic_0001>

<bundles_post_ra>
// kernel: _forward.1
= control target key start
LH: loop header
LB: loop body
LE: loop exit
PB: predicated region body
PF: predicated region fallthrough
CT: control target
= control target key end

     0   :  { %v411_v1 = vmov 0   ;;  %v412_v2 = vmov 0.0   ;;  %vm413_vm0 = vmmov 0   ;;  %s527_s0 = inlined_call_operand.vmem [shape: s32[16,1], index: 0, kind: input, shape index: {}]   ;;  %s528_s1 = inlined_call_operand.vmem [shape: s32[16,1], index: 1, kind: input, shape index: {}]   ;;  %s529_s2 = inlined_call_operand.vmem [shape: bf16[128,32], index: 2, kind: input, shape index: {}]   ;;  %s530_s3 = inlined_call_operand.vmem [shape: bf16[8,32], index: 3, kind: input, shape index: {}]   ;;  %s531_s4 = inlined_call_operand.vmem [shape: bf16[32,128], index: 4, kind: input, shape index: {}]   ;;  %s532_s5 = inlined_call_operand.vmem [shape: f32[1,128], index: 5, kind: input, shape index: {}]   ;;  %s533_s6 = inlined_call_operand.vmem [shape: f32[16,128], index: 6, kind: output, shape index: {0}]   ;;  %s534_s7 = inlined_call_operand.hbm [shape: f32[1,1], index: 7, kind: output, shape index: {1}]  }
   0x1   :  { %v27_v0 = vld [vmem:[%s527_s0] sm:$0xff]  ;;  %369 = vset.pattern.permute.xlu0 %v411_v1  ;;  %334 = vmatprep.subr.bf16.mxu0 %v412_v2  ;;  %v371_v3 = vld [vmem:[%s529_s2 + $0x38] sm:$0xff]   ;;  %v28_v4 = vld [vmem:[%s527_s0 + $0x8] sm:$0xff] }
   0x2   :  { %32 = vperm.xlu0 %369, %v27_v0   ;;  %354 = vmatprep.subr.bf16.mxu1 %v412_v2  ;;  %v372_v5 = vld [vmem:[%s529_s2 + $0x30] sm:$0xff]   ;;  %v225_v6 = vld [vmem:[%s528_s1] sm:$0xff]  ;;  %v373_v7 = vld [vmem:[%s529_s2 + $0x28] sm:$0xff]  }
   0x3   :  { %335 = vmatpush3.bf16.msra.mxu0 %v371_v3  ;;  %370 = vset.pattern.permute.xlu1 %v411_v1  ;;  %v374_v8 = vld [vmem:[%s529_s2 + $0x20] sm:$0xff]  }
   0x4   :  { %336 = vmatprep.subr.bf16.mxu0 %v412_v2  ;;  %350 = vmatprep.mubr.msk.bf16.mxu0 %vm413_vm0, %v412_v2 }
   0x5   :  { %358 = vmatprep.mubr.msk.bf16.mxu1 %vm413_vm0, %v412_v2 }
   0x6   :  { %35 = vperm.xlu0 %369, %v28_v4  }
   0x7   :  { %337 = vmatpush3.bf16.msra.mxu0 %v372_v5 }
   0x8   :  { %338 = vmatprep.subr.bf16.mxu0 %v412_v2 }
   0xa   :  { %248 = vperm.xlu0 %369, %v225_v6  }
   0xb   :  { %339 = vmatpush3.bf16.msra.mxu0 %v373_v7 }
   0xc   :  { %13 = vsyncpa [#allocation3], 0  ;;  %340 = vmatprep.subr.bf16.mxu0 %v412_v2  ;;  %v375_v9 = vld [vmem:[%s529_s2 + $0x18] sm:$0xff]   ;;  %v376_v10 = vld [vmem:[%s529_s2 + $0x10] sm:$0xff]   ;;  %v29_v13 = vlaneseq  ;;  %v414_v17 = vmov 1.0|1.0  }
   0xd   :  { %v377_v11 = vld [vmem:[%s529_s2 + $0x8] sm:$0xff]   ;;  %v378_v12 = vld [vmem:[%s529_s2] sm:$0xff]   ;;  %vm175_vm4 = vcmask 261120   ;;  %vm267_vm8 = vcmask 7168   ;;  %vm284_vm9 = vcmask 0  }
   0xe   :  { %v30_v15 = vand.u32 127, %v29_v13  ;;  %v379_v18 = vld [vmem:[%s531_s4 + $0x8] sm:$0xff]   ;;  %v380_v19 = vld [vmem:[%s531_s4] sm:$0xff]  }
   0xf   :  { %341 = vmatpush3.bf16.msra.mxu0 %v374_v8  ;;  %355 = vmatpush3.bf16.msra.mxu1 %v379_v18  ;;  %v60_v20 = vld [vmem:[%s530_s3] sm:$0xf]  ;;  %v226_v38 = vld [vmem:[%s528_s1 + $0x8] sm:$0xff]  ;;  %s415_s1 = smov [#allocation2]  }
  0x10   :  { %342 = vmatprep.subr.bf16.mxu0 %v412_v2  ;;  %356 = vmatprep.subr.bf16.mxu1 %v412_v2  ;;  %v61_v22 = vunpack.c.l.bf16 %v60_v20  ;;  %v316_v29 = vld [vmem:[%s532_s5] ss:$0 sm:$0xff]  ;;  %vm220_vm5 = vcmp.ge.s32.totalorder %v30_v15, 65 }
  0x13   :  { %343 = vmatpush3.bf16.msra.mxu0 %v375_v9  ;;  %357 = vmatpush3.bf16.msra.mxu1 %v380_v19 }
  0x14   :  { %344 = vmatprep.subr.bf16.mxu0 %v412_v2 }
  0x17   :  { %345 = vmatpush3.bf16.msra.mxu0 %v376_v10 }
  0x18   :  { %346 = vmatprep.subr.bf16.mxu0 %v412_v2 }
  0x1b   :  { %347 = vmatpush3.bf16.msra.mxu0 %v377_v11 }
  0x1c   :  { %348 = vmatprep.subr.bf16.mxu0 %v412_v2 }
  0x1f   :  { %349 = vmatpush3.bf16.msra.mxu0 %v378_v12 }
  0x7d   :  { %v33_v14 = vpop.permute.xlu0 %32 }
  0x7e   :  { %vm37_vm1 = vcmp.eq.s32.totalorder %v30_v15, %v33_v14 }
  0x81   :  { %v36_v16 = vpop.permute.xlu0 %35 }
  0x82   :  { %vm38_vm2 = vcmp.eq.s32.totalorder %v30_v15, %v36_v16 }
  0x83   :  { %vm314_vm3 = vmpackc.low %vm38_vm2, %vm37_vm1 }
  0x84   :  { %351 = vmatmul.mubr.msk.bf16.vlgmr.msra.gmra.mxu0 %vm314_vm3, %v414_v17 }
  0x85   :  { %v249_v45 = vpop.permute.xlu0 %248 }
  0x86   :  { %vm253_vm6 = vcmp.eq.s32.totalorder %v30_v15, %v249_v45 }
  0x87   :  { %v320_v48 = vsel %vm253_vm6, 1.0, %v412_v2 }
 0x144   :  { %v144_v21 = vpop.f32.mrf.mxu0 }
 0x145   :  { %v145_v25 = vadd.f32 %v144_v21, %v61_v22 }
 0x146   :  { %v352_v23 = vpop.f32.mrf.mxu0 }
 0x148   :  { %v147_v24 = vpop.f32.mrf.mxu0 }
 0x149   :  { %v148_v26 = vadd.f32 %v147_v24, %v61_v22 }
 0x14a   :  { %v353_v27 = vpop.f32.mrf.mxu0 }
 0x14b   :  { %v151_v28 = vpack.c.bf16 %v148_v26, %v145_v25 }
 0x14d   :  { %359 = vmatmul.mubr.msk.bf16.vlgmr.msra.gmra.mxu1 %vm175_vm4, %v151_v28 }
 0x20d   :  { %v213_v30 = vpop.f32.mrf.mxu1 }
 0x20e   :  { %v214_v31 = vadd.f32 %v316_v29, %v213_v30 }
 0x20f   :  { %v360_v32 = vpop.f32.mrf.mxu1 }
 0x210   :  { %v221_v33 = vsel %vm220_vm5, -1e+30, %v214_v31 }
 0x211   :  { %223 = vst [vmem:[%s533_s6] sm:$0xff] %v221_v33  ;;  %227 = vmax.xlane.f32.xlu1 %v221_v33  ;;  %v216_v34 = vpop.f32.mrf.mxu1  ;;  %v259_v49 = vmul.f32 %v320_v48, %v221_v33 }
 0x212   :  { %v217_v35 = vadd.f32 %v316_v29, %v216_v34 }
 0x213   :  { %v361_v36 = vpop.f32.mrf.mxu1 }
 0x214   :  { %v222_v37 = vsel %vm220_vm5, -1e+30, %v217_v35 }
 0x215   :  { %224 = vst [vmem:[%s533_s6 + $0x8] sm:$0xff] %v222_v37  ;;  %229 = vmax.xlane.f32.xlu1 %v222_v37  ;;  %s294_s6 = sshll.u32 %s415_s1, 4  ;;  %s295_s6 = int_to_ptr.vmem [resolvable:$true] %s294_s6 }
 0x216   :  { %s389_s0 = scalar_lea.vmem %s295_s6, 16  ;;  %s393_s11 = scalar_lea.vmem %s295_s6, 32 }
 0x217   :  { %p390_p0 = scmp.ne.s32.totalorder %s295_s6, %s389_s0  ;;  %p394_p1 = scmp.lt.s32.totalorder %s295_s6, %s295_s6 }
 0x218   :  { %p395_p2 = scmp.lt.s32.totalorder %s393_s11, %s389_s0 }
 0x21a   :  { %p396_p3 = por %p395_p2, %p394_p1 }
 0x21c   :  { %p397_p4 = pnand %p396_p3, %p390_p0 }
 0x226   :  { %251 = vperm.xlu1 %370, %v226_v38  }
 0x29a   :  { %v228_v39 = vpop.xlane.xlu1 %227 }
 0x29b   :  { %v231_v40 = vsub.f32 %v221_v33, %v228_v39 }
 0x29d   :  { %v233_v41 = vmul.f32 1.442695, %v231_v40 }
 0x29e   :  { %v230_v42 = vpop.xlane.xlu1 %229 }
 0x29f   :  { %381 = vpow2.f32 %v233_v41  ;;  %v232_v43 = vsub.f32 %v222_v37, %v230_v42 }
 0x2a1   :  { %v235_v44 = vmul.f32 1.442695, %v232_v43 }
 0x2a2   :  { %v252_v46 = vpop.permute.xlu1 %251 }
 0x2a3   :  { %383 = vpow2.f32 %v235_v44  ;;  %vm254_vm7 = vcmp.eq.s32.totalorder %v30_v15, %v252_v46 }
 0x2a4   :  { %v321_v51 = vsel %vm254_vm7, 1.0, %v412_v2 }
 0x2a5   :  { %v260_v52 = vmul.f32 %v321_v51, %v222_v37 }
 0x2ac   :  { %v382_v47 = vpop.eup %381 }
 0x2ad   :  { %237 = vadd.xlane.f32.xlu0 %v382_v47 }
 0x2b0   :  { %v384_v50 = vpop.eup %383 }
 0x2b1   :  { %239 = vadd.xlane.f32.xlu1 %v384_v50  ;;  %261 = vadd.xlane.f32.xlu0 %v259_v49 }
 0x2b5   :  { %263 = vadd.xlane.f32.xlu0 %v260_v52 }
 0x336   :  { %v238_v53 = vpop.xlane.xlu0 %237 }
 0x337   :  { %385 = vlog2.f32 %v238_v53 }
 0x33a   :  { %v240_v54 = vpop.xlane.xlu1 %239  ;;  %v262_v57 = vpop.xlane.xlu0 %261 }
 0x33b   :  { %387 = vlog2.f32 %v240_v54 }
 0x33e   :  { %v264_v63 = vpop.xlane.xlu0 %263 }
 0x344   :  { %v386_v55 = vpop.eup %385 }
 0x345   :  { %v242_v56 = vmul.f32 0.6931472, %v386_v55 }
 0x347   :  { %v245_v58 = vadd.f32 %v242_v56, %v228_v39 }
 0x348   :  { %v388_v59 = vpop.eup %387 }
 0x349   :  { %v244_v60 = vmul.f32 0.6931472, %v388_v59  ;;  %v265_v61 = vsub.f32 %v245_v58, %v262_v57 }
 0x34b   :  { %v246_v62 = vadd.f32 %v244_v60, %v230_v42  ;;  %v268_v1 = vsel %vm267_vm8, %v265_v61, 0.0 }
 0x34d   :  { %v266_v0 = vsub.f32 %v246_v62, %v264_v63 }
 0x34f   :  { %v269_v2 = vsel %vm267_vm8, %v266_v0, 0.0 }
 0x350   :  { %v270_v3 = vadd.f32 %v269_v2, %v268_v1 }
 0x352   :  { %271 = vadd.xlane.f32.xlu0 %v270_v3 }
 0x3db   :  { %v272_v4 = vpop.xlane.xlu0 %271 }
 0x3dc   :  { %v273_v5 = vrot.slane %v272_v4, 4 }
 0x3de   :  { %v274_v6 = vadd.f32 %v273_v5, %v272_v4 }
 0x3e0   :  { %v275_v7 = vrot.slane %v274_v6, 2 }
 0x3e2   :  { %v276_v8 = vadd.f32 %v275_v7, %v274_v6 }
 0x3e4   :  { %v277_v9 = vrot.slane %v276_v8, 1 }
 0x3e6   :  { %v278_v10 = vadd.f32 %v277_v9, %v276_v8 }
 0x3e8   :  { %362 = vpush %v278_v10 }
 0x419   :  { %s363_s9 = spop %362 }
 0x41a   :  { %s282_s10 = smul.f32 0.0625, %s363_s9 }
 0x41c   :  { %v283_v11 = vstv %s282_s10 }
 0x41d   :  { %285 = vst.msk [vmem:[#allocation2] sm:$0x1] %vm284_vm9, %v283_v11 }
 0x41e   :  { %400 = shalt.err (!%p397_p4)
}
 0x41f   :  { %297 = dma.vmem_to_hbm [thread:$0]  %s295_s6, 16, %s534_s7, [#allocation3]  }
 0x420   :  { %409 = dma.done.wait [#allocation3], 16  }
 0x421   :  { %410 = vsyncadd [#allocation3], 4294967280 }
 0x422   :  { %303 = vsyncpa [#allocation3], 1 }

</bundles_post_ra>
